<compile_context>
chip_gen: v7x
topology: tpu7x:2x2x1
jax: 0.10.0
libtpu: 0.0.40
codegen_flags: <defaults>
</compile_context>

<pallas_src>
import jax
import jax.numpy as jnp
from jax.experimental import pallas as pl
from jax.experimental.pallas import tpu as pltpu


# ----------------------------- reference (plain JAX) ------------------------

def _residual2_reference(x, x2):
    # fn(x, x2) + x  with fn = x * sigmoid(x2) + tanh(x2)
    return x * jax.nn.sigmoid(x2) + jnp.tanh(x2) + x


def _residual2_fallback(x, x2):
    # Plain-JAX path: single fused XLA elementwise pass (used for tiny or
    # non-128-divisible inputs where a pad + kernel + slice would only add
    # extra HBM round trips).
    xf = x.astype(jnp.float32)
    x2f = x2.astype(jnp.float32)
    return _residual2_reference(xf, x2f).astype(x.dtype)


# ----------------------------- Pallas kernel --------------------------------

def _residual2_kernel(x_ref, x2_ref, o_ref):
    x = x_ref[...].astype(jnp.float32)
    x2 = x2_ref[...].astype(jnp.float32)

    # Exact math: this op is HBM-bound on every TPU generation, so the VPU/EUP
    # have plenty of slack — no accuracy trade needed.
    sig = 1.0 / (1.0 + jnp.exp(-x2))      # sigmoid(x2)
    tnh = jnp.tanh(x2)                     # tanh(x2)

    # fused: fn(x, x2) + x
    o_ref[...] = (x * sig + tnh + x).astype(o_ref.dtype)


# ----------------------------- wrapper ---------------------------------------

def _round_up(a, b):
    return ((a + b - 1) // b) * b


def _default_block_bytes():
    # ~4 MiB/array on v6e/v7x (3 arrays x 2 buffers = 24 MiB, inside the
    # 32 MiB scoped-VMEM limit set below); ~2 MiB on v5e where each grid step
    # is already ~7 us at 0.82 TB/s so step overhead is negligible.
    try:
        kind = jax.devices()[0].device_kind.lower()
    except Exception:
        kind = ""
    if "v5 lite" in kind or "v5lite" in kind or "v5e" in kind:
        return 2 * 1024 * 1024
    return 4 * 1024 * 1024


def residual2(x, x2, *, block_bytes=None, min_pallas_bytes=1 << 20,
              force_pallas=False):
    """Residual2.forward(x, x2) = fn(x, x2) + x for any-shape inputs."""
    assert x.shape == x2.shape and x.dtype == x2.dtype
    orig_shape = x.shape
    total = x.size
    itemsize = jnp.dtype(x.dtype).itemsize
    # Native sublane tile: 8 for 4-byte, 16 for 2-byte, 32 for 1-byte dtypes.
    sublane = max(8, 32 // itemsize)

    # Lane-dense slab layout: widest last dim (multiple of 128) that divides
    # the element count exactly and leaves >= one sublane tile of rows.
    cols = None
    for c in (4096, 2048, 1024, 512, 256, 128):
        if total % c == 0 and total // c >= sublane:
            cols = c
            break

    too_small = (total * itemsize < min_pallas_bytes) and not force_pallas
    if cols is None or too_small:
        # No clean lane-dense factorization (or tiny input): a fused XLA
        # elementwise pass beats pad + kernel + slice HBM round trips.
        return _residual2_fallback(x, x2)

    rows = total // cols
    if block_bytes is None:
        block_bytes = _default_block_bytes()

    # Target ~block_bytes per array per grid step, but keep >= 2 grid steps
    # when the row count allows it so v7x megacore (2 TCs sharing HBM) gets
    # work on both cores.
    num_blocks = max(2, pl.cdiv(rows * cols * itemsize, block_bytes))
    block_rows = _round_up(pl.cdiv(rows, num_blocks), sublane)
    block_rows = min(block_rows, _round_up(rows, sublane))
    grid = (pl.cdiv(rows, block_rows),)

    xs = x.reshape(rows, cols)
    x2s = x2.reshape(rows, cols)

    out = pl.pallas_call(
        _residual2_kernel,
        out_shape=jax.ShapeDtypeStruct((rows, cols), x.dtype),
        grid_spec=pl.GridSpec(
            grid=grid,
            in_specs=[
                pl.BlockSpec((block_rows, cols), lambda i: (i, 0)),
                pl.BlockSpec((block_rows, cols), lambda i: (i, 0)),
            ],
            out_specs=pl.BlockSpec((block_rows, cols), lambda i: (i, 0)),
        ),
        compiler_params=pltpu.CompilerParams(
            dimension_semantics=("parallel",),
            vmem_limit_bytes=32 * 1024 * 1024,
        ),
        cost_estimate=pl.CostEstimate(
            flops=5 * total,
            transcendentals=2 * total,
            bytes_accessed=3 * total * itemsize,
        ),
    )(xs, x2s)

    return out.reshape(orig_shape)


# ----------------------------- test -------------------------------------------

if __name__ == "__main__":
    key = jax.random.PRNGKey(0)
    k1, k2, k3, k4, k5, k6 = jax.random.split(key, 6)

    # Module-sized test tensors are tiny, so force the Pallas path explicitly
    # (the auto heuristic would otherwise route them to the plain-JAX pass).
    residual2_pallas = jax.jit(lambda a, b: residual2(a, b, force_pallas=True))
    residual2_auto = jax.jit(residual2)

    # Case 1: small NCHW inputs consistent with Residual2.forward(x, x2).
    x = jax.random.normal(k1, (2, 4, 16, 16), dtype=jnp.float32)
    x2 = jax.random.normal(k2, (2, 4, 16, 16), dtype=jnp.float32)
    out = jax.block_until_ready(residual2_pallas(x, x2))
    ref = _residual2_reference(x, x2)
    assert out.shape == x.shape
    assert jnp.allclose(out, ref, atol=1e-4, rtol=1e-4), "mismatch vs reference (case 1)"

    # Case 2: larger lane-dense shape -> 2 "parallel" grid steps.
    y = jax.random.normal(k3, (2, 16, 64, 64), dtype=jnp.float32)
    y2 = jax.random.normal(k4, (2, 16, 64, 64), dtype=jnp.float32)
    out2 = jax.block_until_ready(residual2_pallas(y, y2))
    ref2 = _residual2_reference(y, y2)
    assert out2.shape == y.shape
    assert jnp.allclose(out2, ref2, atol=1e-4, rtol=1e-4), "mismatch vs reference (case 2)"

    # Case 3: awkward spatial size (1800 elems, not a multiple of 128) ->
    # single fused plain-JAX pass, no pad/slice HBM round trips.
    z = jax.random.normal(k5, (2, 3, 15, 20), dtype=jnp.float32)
    z2 = jax.random.normal(k6, (2, 3, 15, 20), dtype=jnp.float32)
    out3 = jax.block_until_ready(residual2_auto(z, z2))
    ref3 = _residual2_reference(z, z2)
    assert out3.shape == z.shape
    assert jnp.allclose(out3, ref3, atol=1e-4, rtol=1e-4), "mismatch vs reference (case 3)"

    print("KERNEL_OK")
</pallas_src>

<mosaic_0001>
module attributes {stable_mosaic.version = 11 : i64} {
  func.func @_residual2_kernel(%arg0: i32, %arg1: memref<8x256xf32, #tpu.memory_space<vmem>>, %arg2: memref<8x256xf32, #tpu.memory_space<vmem>>, %arg3: memref<8x256xf32, #tpu.memory_space<vmem>>) attributes {dimension_semantics = [#tpu.dimension_semantics<parallel>], iteration_bounds = array<i64: 1>, scalar_prefetch = 0 : i64, scratch_operands = 0 : i64, tpu.core_type = #tpu.core_type<tc>, window_params = [{transform_indices = @transform_0, window_bounds = array<i64: 8, 256>}, {transform_indices = @transform_1, window_bounds = array<i64: 8, 256>}, {transform_indices = @transform_2, window_bounds = array<i64: 8, 256>}]} {
    %c0 = arith.constant 0 : index
    %c0_0 = arith.constant 0 : index
    %0 = vector.load %arg1[%c0, %c0_0] : memref<8x256xf32, #tpu.memory_space<vmem>>, vector<8x256xf32>
    %c0_1 = arith.constant 0 : index
    %c0_2 = arith.constant 0 : index
    %1 = vector.load %arg2[%c0_1, %c0_2] : memref<8x256xf32, #tpu.memory_space<vmem>>, vector<8x256xf32>
    %cst = arith.constant 0.000000e+00 : f32
    %2 = vector.broadcast %cst : f32 to vector<8x256xf32>
    %3 = arith.subf %2, %1 : vector<8x256xf32>
    %4 = math.exp %3 : vector<8x256xf32>
    %cst_3 = arith.constant 1.000000e+00 : f32
    %5 = vector.broadcast %cst_3 : f32 to vector<8x256xf32>
    %6 = arith.addf %5, %4 : vector<8x256xf32>
    %cst_4 = arith.constant 1.000000e+00 : f32
    %7 = vector.broadcast %cst_4 : f32 to vector<8x256xf32>
    %8 = arith.divf %7, %6 : vector<8x256xf32>
    %9 = math.tanh %1 : vector<8x256xf32>
    %10 = arith.mulf %0, %8 : vector<8x256xf32>
    %11 = arith.addf %10, %9 : vector<8x256xf32>
    %12 = arith.addf %11, %0 : vector<8x256xf32>
    %c0_5 = arith.constant 0 : index
    %c0_6 = arith.constant 0 : index
    %13 = vector.load %arg3[%c0_5, %c0_6] : memref<8x256xf32, #tpu.memory_space<vmem>>, vector<8x256xf32>
    tpu.vector_store %arg3[%c0_5, %c0_6], %12 {strides = array<i32>} : memref<8x256xf32, #tpu.memory_space<vmem>>, vector<8x256xf32>,
    return
  }
  func.func @transform_0(%arg0: i32) -> (i32, i32) {
    %c0_i32 = arith.constant 0 : i32
    %c0_i32_0 = arith.constant 0 : i32
    return %arg0, %c0_i32 : i32, i32
  }
  func.func @transform_1(%arg0: i32) -> (i32, i32) {
    %c0_i32 = arith.constant 0 : i32
    %c0_i32_0 = arith.constant 0 : i32
    return %arg0, %c0_i32 : i32, i32
  }
  func.func @transform_2(%arg0: i32) -> (i32, i32) {
    %c0_i32 = arith.constant 0 : i32
    %c0_i32_0 = arith.constant 0 : i32
    return %arg0, %c0_i32 : i32, i32
  }
}

</mosaic_0001>

<bundles_post_ra>
// kernel: _lambda_.1
= control target key start
LH: loop header
LB: loop body
LE: loop exit
PB: predicated region body
PF: predicated region fallthrough
CT: control target
= control target key end

     0   :  { %s86_s1 = inlined_call_operand.vmem [shape: f32[8,256], index: 1, kind: input, shape index: {}]   ;;  %s87_s0 = inlined_call_operand.vmem [shape: f32[8,256], index: 0, kind: input, shape index: {}]   ;;  %s88_s2 = inlined_call_operand.vmem [shape: f32[8,256], index: 2, kind: output, shape index: {}]  }
   0x1   :  { %v13_v0 = vld [vmem:[%s86_s1] sm:$0xff]  ;;  %v14_v2 = vld [vmem:[%s86_s1 + $0x8] sm:$0xff] }
   0x2   :  { %v15_v1 = vsub.f32 0.0, %v13_v0  ;;  %v16_v3 = vsub.f32 0.0, %v14_v2  ;;  %v11_v11 = vld [vmem:[%s87_s0] sm:$0xff]  ;;  %v12_v13 = vld [vmem:[%s87_s0 + $0x8] sm:$0xff] }
   0x4   :  { %v17_v4 = vmul.f32 1.442695, %v15_v1  ;;  %v19_v5 = vmul.f32 1.442695, %v16_v3 }
   0x6   :  { %41 = vpow2.f32 %v17_v4 }
   0x7   :  { %43 = vpow2.f32 %v19_v5 }
   0x8   :  { %45 = vtanh.f32 %v13_v0 }
   0x9   :  { %47 = vtanh.f32 %v14_v2 }
  0x10   :  { %v42_v6 = vpop.eup %41 }
  0x11   :  { %v44_v7 = vpop.eup %43  ;;  %v21_v8 = vadd.f32 1.0, %v42_v6 }
  0x12   :  { %v22_v9 = vadd.f32 1.0, %v44_v7  ;;  %v46_v10 = vpop.eup %45 }
  0x13   :  { %49 = vrcp.f32 %v21_v8  ;;  %v48_v12 = vpop.eup %47 }
  0x14   :  { %51 = vrcp.f32 %v22_v9 }
  0x1d   :  { %v50_v14 = vpop.eup %49 }
  0x1e   :  { %v52_v15 = vpop.eup %51  ;;  %v29_v16 = vmul.f32 %v50_v14, %v11_v11 }
  0x1f   :  { %v30_v17 = vmul.f32 %v52_v15, %v12_v13 }
  0x20   :  { %v31_v18 = vadd.f32 %v46_v10, %v29_v16 }
  0x21   :  { %v32_v19 = vadd.f32 %v48_v12, %v30_v17 }
  0x22   :  { %v33_v20 = vadd.f32 %v31_v18, %v11_v11 }
  0x23   :  { %v34_v21 = vadd.f32 %v32_v19, %v12_v13 }
  0x24   :  { %35 = vst [vmem:[%s88_s2] sm:$0xff] %v33_v20 }
  0x25   :  { %36 = vst [vmem:[%s88_s2 + $0x8] sm:$0xff] %v34_v21 }

</bundles_post_ra>
